<compile_context>
chip_gen: v5e
topology: v5e:2x2
jax: 0.10.0
libtpu: 0.0.40
codegen_flags: <defaults>
</compile_context>

<pallas_src>
import functools

import jax
import jax.numpy as jnp
import numpy as np
from jax import lax
from jax.experimental import pallas as pl
from jax.experimental.pallas import tpu as pltpu

EPS = 1e-5                      # nn.LayerNorm default eps
MXU_DTYPE = jnp.bfloat16        # matmul operand dtype (accumulation stays f32)
VMEM_LIMIT = 48 * 1024 * 1024   # explicit budget: leaves headroom on v7x's 64 MiB VMEM
TARGET_TILE_T = 256             # target time rows per block


def _layernorm(x, g, b):
    mu = jnp.mean(x, axis=-1, keepdims=True)
    var = jnp.mean(jnp.square(x - mu), axis=-1, keepdims=True)
    return (x - mu) * lax.rsqrt(var + EPS) * g + b


def _silu(x):
    return x * jax.nn.sigmoid(x)


def _pick_tile(n, target=TARGET_TILE_T):
    """Largest time tile satisfying the (8,128) block rule: either the full extent,
    or a multiple of 8 that divides it."""
    if n <= target:
        return n
    t = (target // 8) * 8
    while t >= 8:
        if n % t == 0:
            return t
        t -= 8
    return n


def _full_spec(arr):
    n = arr.ndim
    return pl.BlockSpec(arr.shape, lambda b, t, _n=n: (0,) * _n)


# --------------------------- Halfer (downsample) kernel ---------------------------
def halfer_kernel(x_ref, g_ref, b_ref, wcat_ref, bcat_ref, ffw_ref, ffb_ref, o_ref,
                  *, dim, d2, zero_last_odd):
    xp = x_ref[0].astype(jnp.float32)               # (tile, 2*dim) = [even | odd] rows
    g, beta = g_ref[0], b_ref[0]
    ne = _layernorm(xp[:, :dim], g, beta)           # PreNorm on even time rows
    no = _layernorm(xp[:, dim:], g, beta)           # PreNorm on odd time rows
    if zero_last_odd:
        # Halfer appends a zero vector AFTER PreNorm (empty_vec), so the padded odd
        # row must be exactly zero post-norm.  Only the last time tile pays for it.
        last_tile = pl.program_id(1) == pl.num_programs(1) - 1
        rows = lax.broadcasted_iota(jnp.int32, no.shape, 0)
        no = jnp.where(jnp.logical_and(last_tile, rows == no.shape[0] - 1), 0.0, no)
    xn = jnp.concatenate([ne, no], axis=-1).astype(MXU_DTYPE)        # (tile, 2*dim)
    # fused stride-2 conv: both taps and both GLU halves in a single MXU pass
    y = jnp.dot(xn, wcat_ref[...], preferred_element_type=jnp.float32) + bcat_ref[0]
    a, bg = y[:, :d2], y[:, d2:]
    gated = (a * _silu(bg)).astype(MXU_DTYPE)        # a * SiLU(b)  (GLU), f32 math
    out = jnp.dot(gated, ffw_ref[...], preferred_element_type=jnp.float32) + ffb_ref[0]
    o_ref[0] = out.astype(o_ref.dtype)


# ------------------------ InverseHalfer (upsample) kernels -------------------------
def _inverse_core(h, g, beta, wt, cb2, ffw, ffb, d2):
    tile = h.shape[0]
    hx = _layernorm(h.astype(jnp.float32), g, beta).astype(MXU_DTYPE)
    # fused ConvTranspose taps: one (D, 2*d2) matmul -> [y_even | y_odd]
    y = jnp.dot(hx, wt, preferred_element_type=jnp.float32) + cb2
    s = _silu(y)
    # single FF matmul for both taps: row-stack so the shared FF weight is pushed once
    s2 = jnp.concatenate([s[:, :d2], s[:, d2:]], axis=0).astype(MXU_DTYPE)
    o2 = jnp.dot(s2, ffw, preferred_element_type=jnp.float32) + ffb    # (2*tile, D)
    # pair layout: lanes [:D] -> output time 2t, lanes [D:] -> output time 2t+1
    return jnp.concatenate([o2[:tile, :], o2[tile:, :]], axis=-1)      # (tile, 2*D)


def inverse_halfer_kernel(h_ref, g_ref, b_ref, wt_ref, cb_ref, ffw_ref, ffb_ref,
                          o_ref, *, d2):
    pair = _inverse_core(h_ref[0], g_ref[0], b_ref[0], wt_ref[...], cb_ref[0],
                         ffw_ref[...], ffb_ref[0], d2)
    o_ref[0] = pair.astype(o_ref.dtype)


def inverse_halfer_loss_kernel(h_ref, x_ref, keep_ref, g_ref, b_ref, wt_ref, cb_ref,
                               ffw_ref, ffb_ref, o_ref, loss_ref, *, dim, d2):
    pair = _inverse_core(h_ref[0], g_ref[0], b_ref[0], wt_ref[...], cb_ref[0],
                         ffw_ref[...], ffb_ref[0], d2)
    o_ref[0] = pair.astype(o_ref.dtype)
    # fused masked-MSE partial sum (restored_x never re-read from HBM)
    xc = x_ref[0].astype(jnp.float32)                # (tile, 2*dim) pairs of original x
    keep = keep_ref[0]                               # (tile, 2), 1.0 where counted
    de = pair[:, :dim] - xc[:, :dim]
    do = pair[:, dim:] - xc[:, dim:]
    sq = de * de * keep[:, 0:1] + do * do * keep[:, 1:2]
    loss_ref[0, 0] = jnp.sum(sq, keepdims=True)      # (1,1) partial into (b, t, 1, 1)


# ----------------------------------- wrappers --------------------------------------
def halfer_forward(x, length, p):
    B, T, D = x.shape
    odd = (T % 2 == 1)
    if odd:
        x = jnp.pad(x, ((0, 0), (0, 1), (0, 0)))
        length = length + 1
    Th = x.shape[1] // 2
    x_pair = x.reshape(B, Th, 2 * D)                 # free, contiguous reshape
    d2 = p['h_ffw'].shape[0]
    tile = _pick_tile(Th)
    kernel = functools.partial(halfer_kernel, dim=D, d2=d2, zero_last_odd=odd)
    out = pl.pallas_call(
        kernel,
        out_shape=jax.ShapeDtypeStruct((B, Th, D), x.dtype),
        grid=(B, Th // tile),
        in_specs=[pl.BlockSpec((1, tile, 2 * D), lambda b, t: (b, t, 0)),
                  _full_spec(p['h_ln_g']), _full_spec(p['h_ln_b']),
                  _full_spec(p['h_wcat']), _full_spec(p['h_bcat']),
                  _full_spec(p['h_ffw']), _full_spec(p['h_ffb'])],
        out_specs=pl.BlockSpec((1, tile, D), lambda b, t: (b, t, 0)),
        compiler_params=pltpu.CompilerParams(
            dimension_semantics=("parallel", "parallel"),
            vmem_limit_bytes=VMEM_LIMIT),
    )(x_pair, p['h_ln_g'], p['h_ln_b'], p['h_wcat'], p['h_bcat'],
      p['h_ffw'], p['h_ffb'])
    halved_length = (length + 1) // 2                # == floor((len+1)/2), int32
    return out, halved_length


def _inverse_pair(h, p):
    B, Th, D = h.shape
    d2 = p['i_ffw'].shape[0]
    tile = _pick_tile(Th)
    kernel = functools.partial(inverse_halfer_kernel, d2=d2)
    return pl.pallas_call(
        kernel,
        out_shape=jax.ShapeDtypeStruct((B, Th, 2 * D), h.dtype),
        grid=(B, Th // tile),
        in_specs=[pl.BlockSpec((1, tile, D), lambda b, t: (b, t, 0)),
                  _full_spec(p['i_ln_g']), _full_spec(p['i_ln_b']),
                  _full_spec(p['i_wt']), _full_spec(p['i_cb2']),
                  _full_spec(p['i_ffw']), _full_spec(p['i_ffb'])],
        out_specs=pl.BlockSpec((1, tile, 2 * D), lambda b, t: (b, t, 0)),
        compiler_params=pltpu.CompilerParams(
            dimension_semantics=("parallel", "parallel"),
            vmem_limit_bytes=VMEM_LIMIT),
    )(h, p['i_ln_g'], p['i_ln_b'], p['i_wt'], p['i_cb2'], p['i_ffw'], p['i_ffb'])


def _inverse_pair_with_loss(h, x_pair, keep_pair, p):
    B, Th, D = h.shape
    d2 = p['i_ffw'].shape[0]
    tile = _pick_tile(Th)
    nT = Th // tile
    kernel = functools.partial(inverse_halfer_loss_kernel, dim=D, d2=d2)
    pair, partials = pl.pallas_call(
        kernel,
        out_shape=(jax.ShapeDtypeStruct((B, Th, 2 * D), h.dtype),
                   jax.ShapeDtypeStruct((B, nT, 1, 1), jnp.float32)),
        grid=(B, nT),
        in_specs=[pl.BlockSpec((1, tile, D), lambda b, t: (b, t, 0)),
                  pl.BlockSpec((1, tile, 2 * D), lambda b, t: (b, t, 0)),
                  pl.BlockSpec((1, tile, 2), lambda b, t: (b, t, 0)),
                  _full_spec(p['i_ln_g']), _full_spec(p['i_ln_b']),
                  _full_spec(p['i_wt']), _full_spec(p['i_cb2']),
                  _full_spec(p['i_ffw']), _full_spec(p['i_ffb'])],
        out_specs=(pl.BlockSpec((1, tile, 2 * D), lambda b, t: (b, t, 0)),
                   pl.BlockSpec((1, 1, 1, 1), lambda b, t: (b, t, 0, 0))),
        compiler_params=pltpu.CompilerParams(
            dimension_semantics=("parallel", "parallel"),
            vmem_limit_bytes=VMEM_LIMIT),
    )(h, x_pair, keep_pair, p['i_ln_g'], p['i_ln_b'], p['i_wt'], p['i_cb2'],
      p['i_ffw'], p['i_ffb'])
    return pair, jnp.sum(partials)


def inverse_halfer_forward(h, length, p):
    B, Th, D = h.shape
    pair = _inverse_pair(h, p)
    return pair.reshape(B, 2 * Th, D), length * 2


def halfer_block_forward(x, length, mask=None, *, params, training=True):
    """Returns (halved_x, halved_length, recon_loss_fn) like HalferBlock.forward."""
    B, T, D = x.shape
    halved_x, halved_length = halfer_forward(x, length, params)
    Th = halved_x.shape[1]
    odd = (T % 2 == 1)

    # pair-form of x and the loss keep-weights, closed over by recon_loss_fn
    x_p = jnp.pad(x, ((0, 0), (0, 1), (0, 0))) if odd else x
    x_pair = x_p.reshape(B, Th, 2 * D)
    keep = (1.0 - mask.astype(jnp.float32)) if mask is not None \
        else jnp.ones((B, T), jnp.float32)
    if odd:
        keep = jnp.pad(keep, ((0, 0), (0, 1)))       # padded row never counted
    keep_pair = keep.reshape(B, Th, 2)

    def recon_loss_fn(quantized_x):
        if training:
            pair, sq_sum = _inverse_pair_with_loss(quantized_x, x_pair, keep_pair, params)
            # masked_fill then .mean(): denominator is the FULL element count B*T*D
            loss = (sq_sum / float(B * T * D)).reshape(1)
        else:
            pair = _inverse_pair(quantized_x, params)
            loss = jnp.zeros((1,), jnp.float32)
        restored_x = pair.reshape(B, 2 * Th, D)[:, :T, :]
        return loss, restored_x

    return halved_x, halved_length, recon_loss_fn


# ----------------------------- parameter initialization -----------------------------
def init_params(key, dim, exp_f=2):
    ks = jax.random.split(key, 8)
    d2 = dim * exp_f            # GLU width / InverseHalfer conv out channels
    d4 = d2 * 2                 # Halfer conv out channels

    def u(k, shape, fan_in):
        bound = 1.0 / np.sqrt(fan_in)
        return jax.random.uniform(k, shape, jnp.float32, -bound, bound)

    conv_w = u(ks[0], (d4, dim, 2), dim * 2)     # Conv1d(dim, d4, k=2) weight (out,in,k)
    conv_b = u(ks[1], (d4,), dim * 2)
    ff_w = u(ks[2], (dim, d2), d2)               # Linear(d2, dim) weight (out,in)
    ff_b = u(ks[3], (dim,), d2)
    tconv_w = u(ks[4], (dim, d2, 2), dim * 2)    # ConvTranspose1d(dim, d2, k=2) (in,out,k)
    tconv_b = u(ks[5], (d2,), dim * 2)
    iff_w = u(ks[6], (dim, d2), d2)              # Linear(d2, dim)
    iff_b = u(ks[7], (dim,), d2)

    # even/odd conv taps, GLU halves fused into one (2*dim, 2*d2) matrix:
    #   rows [:dim] multiply the even (normed) row, rows [dim:] the odd row;
    #   cols [:d2] -> "a", cols [d2:] -> gate "b".
    wae = jnp.transpose(conv_w[:d2, :, 0])
    wao = jnp.transpose(conv_w[:d2, :, 1])
    wbe = jnp.transpose(conv_w[d2:, :, 0])
    wbo = jnp.transpose(conv_w[d2:, :, 1])
    h_wcat = jnp.concatenate(
        [jnp.concatenate([wae, wbe], axis=1),
         jnp.concatenate([wao, wbo], axis=1)], axis=0).astype(MXU_DTYPE)
    # transposed-conv taps fused into one (dim, 2*d2) matrix: cols [:d2] -> time 2t,
    # cols [d2:] -> time 2t+1
    i_wt = jnp.concatenate([tconv_w[:, :, 0], tconv_w[:, :, 1]], axis=1).astype(MXU_DTYPE)
    i_cb2 = jnp.concatenate([tconv_b, tconv_b]).reshape(1, 2 * d2)

    return dict(
        # PreNorm(Halfer) LayerNorm
        h_ln_g=jnp.ones((1, dim), jnp.float32),
        h_ln_b=jnp.zeros((1, dim), jnp.float32),
        h_wcat=h_wcat,                                   # bf16 (2*dim, 2*d2)
        h_bcat=conv_b.reshape(1, d4).astype(jnp.float32),
        h_ffw=jnp.transpose(ff_w).astype(MXU_DTYPE),     # bf16 (d2, dim)
        h_ffb=ff_b.reshape(1, dim),
        # PreNorm(InverseHalfer) LayerNorm
        i_ln_g=jnp.ones((1, dim), jnp.float32),
        i_ln_b=jnp.zeros((1, dim), jnp.float32),
        i_wt=i_wt,                                       # bf16 (dim, 2*d2)
        i_cb2=i_cb2.astype(jnp.float32),
        i_ffw=jnp.transpose(iff_w).astype(MXU_DTYPE),    # bf16 (d2, dim)
        i_ffb=iff_b.reshape(1, dim),
    )


# ----------------------------- pure-JAX reference (check) ---------------------------
def ref_halfer_block(x, length, mask, p, training=True):
    f32, bf = jnp.float32, MXU_DTYPE
    dot = functools.partial(jnp.einsum, preferred_element_type=f32)
    B, T, D = x.shape
    d2 = p['h_ffw'].shape[0]

    xn = _layernorm(x.astype(f32), p['h_ln_g'][0], p['h_ln_b'][0])
    L = length
    if T % 2 == 1:
        xn = jnp.concatenate([xn, jnp.zeros((B, 1, D), f32)], axis=1)
        L = L + 1
    xe = xn[:, 0::2].astype(bf)
    xo = xn[:, 1::2].astype(bf)
    wae, wbe = p['h_wcat'][:D, :d2], p['h_wcat'][:D, d2:]
    wao, wbo = p['h_wcat'][D:, :d2], p['h_wcat'][D:, d2:]
    ba, bb = p['h_bcat'][0, :d2], p['h_bcat'][0, d2:]
    a = dot('btd,de->bte', xe, wae) + dot('btd,de->bte', xo, wao) + ba
    bg = dot('btd,de->bte', xe, wbe) + dot('btd,de->bte', xo, wbo) + bb
    gated = (a * (bg * jax.nn.sigmoid(bg))).astype(bf)
    halved = dot('bte,ed->btd', gated, p['h_ffw']) + p['h_ffb'][0]
    hlen = (L + 1) // 2

    hn = _layernorm(halved, p['i_ln_g'][0], p['i_ln_b'][0]).astype(bf)
    wt0, wt1 = p['i_wt'][:, :d2], p['i_wt'][:, d2:]
    cb = p['i_cb2'][0, :d2]
    ye = dot('btd,de->bte', hn, wt0) + cb
    yo = dot('btd,de->bte', hn, wt1) + cb
    oe = dot('bte,ed->btd', (ye * jax.nn.sigmoid(ye)).astype(bf), p['i_ffw']) + p['i_ffb'][0]
    oo = dot('bte,ed->btd', (yo * jax.nn.sigmoid(yo)).astype(bf), p['i_ffw']) + p['i_ffb'][0]
    restored = jnp.stack([oe, oo], axis=2).reshape(B, -1, D)[:, :T]
    if training:
        l = (restored - x.astype(f32)) ** 2
        if mask is not None:
            l = jnp.where(mask[..., None], 0.0, l)
        loss = l.mean()
    else:
        loss = jnp.zeros(())
    return halved, hlen, loss, restored


# ---------------------------------------- main ---------------------------------------
if __name__ == "__main__":
    D, EXP_F = 32, 2
    key = jax.random.PRNGKey(0)
    kp, kx_even, kx_odd = jax.random.split(key, 3)
    params = init_params(kp, D, EXP_F)

    # even-T and odd-T (exercises the post-norm zero-padding path)
    for (B, T, kx) in [(2, 8, kx_even), (2, 9, kx_odd)]:
        x = jax.random.normal(kx, (B, T, D), jnp.float32)
        length = jnp.array([T, T - 2], jnp.int32)
        mask = jnp.arange(T)[None, :] >= length[:, None]      # True = padded position

        halved_x, halved_length, recon_loss_fn = halfer_block_forward(
            x, length, mask, params=params, training=True)
        loss, restored_x = recon_loss_fn(halved_x)
        jax.block_until_ready((halved_x, halved_length, loss, restored_x))

        r_h, r_len, r_loss, r_rest = ref_halfer_block(x, length, mask, params, training=True)
        np.testing.assert_allclose(np.asarray(halved_x), np.asarray(r_h),
                                   rtol=2e-3, atol=2e-3)
        np.testing.assert_allclose(np.asarray(restored_x), np.asarray(r_rest),
                                   rtol=2e-3, atol=2e-3)
        np.testing.assert_allclose(np.asarray(halved_length), np.asarray(r_len))
        np.testing.assert_allclose(float(loss[0]), float(r_loss), rtol=2e-3, atol=2e-3)
        assert halved_x.shape == (B, (T + 1) // 2, D)
        assert restored_x.shape == (B, T, D)

    print("KERNEL_OK")
</pallas_src>

<mosaic_0001>
module attributes {stable_mosaic.version = 11 : i64} {
  func.func @halfer_kernel(%arg0: i32, %arg1: i32, %arg2: memref<1x4x64xf32, #tpu.memory_space<vmem>>, %arg3: memref<1x32xf32, #tpu.memory_space<vmem>>, %arg4: memref<1x32xf32, #tpu.memory_space<vmem>>, %arg5: memref<64x128xbf16, #tpu.memory_space<vmem>>, %arg6: memref<1x128xf32, #tpu.memory_space<vmem>>, %arg7: memref<64x32xbf16, #tpu.memory_space<vmem>>, %arg8: memref<1x32xf32, #tpu.memory_space<vmem>>, %arg9: memref<1x4x32xf32, #tpu.memory_space<vmem>>) attributes {dimension_semantics = [#tpu.dimension_semantics<parallel>, #tpu.dimension_semantics<parallel>], iteration_bounds = array<i64: 2, 1>, scalar_prefetch = 0 : i64, scratch_operands = 0 : i64, tpu.core_type = #tpu.core_type<tc>, window_params = [{transform_indices = @transform_0, window_bounds = array<i64: 1, 4, 64>}, {pipeline_mode = #tpu.pipeline_mode<synchronous>, transform_indices = @transform_1, window_bounds = array<i64: 1, 32>}, {pipeline_mode = #tpu.pipeline_mode<synchronous>, transform_indices = @transform_2, window_bounds = array<i64: 1, 32>}, {pipeline_mode = #tpu.pipeline_mode<synchronous>, transform_indices = @transform_3, window_bounds = array<i64: 64, 128>}, {pipeline_mode = #tpu.pipeline_mode<synchronous>, transform_indices = @transform_4, window_bounds = array<i64: 1, 128>}, {pipeline_mode = #tpu.pipeline_mode<synchronous>, transform_indices = @transform_5, window_bounds = array<i64: 64, 32>}, {pipeline_mode = #tpu.pipeline_mode<synchronous>, transform_indices = @transform_6, window_bounds = array<i64: 1, 32>}, {transform_indices = @transform_7, window_bounds = array<i64: 1, 4, 32>}]} {
    %c0 = arith.constant 0 : index
    %c0_0 = arith.constant 0 : index
    %c0_1 = arith.constant 0 : index
    %0 = vector.load %arg2[%c0, %c0_0, %c0_1] : memref<1x4x64xf32, #tpu.memory_space<vmem>>, vector<1x4x64xf32>
    %1 = vector.shape_cast %0 : vector<1x4x64xf32> to vector<4x64xf32>
    %c0_2 = arith.constant 0 : index
    %c0_3 = arith.constant 0 : index
    %2 = vector.load %arg3[%c0_2, %c0_3] : memref<1x32xf32, #tpu.memory_space<vmem>>, vector<1x32xf32>
    %3 = vector.shape_cast %2 : vector<1x32xf32> to vector<32xf32>
    %c0_4 = arith.constant 0 : index
    %c0_5 = arith.constant 0 : index
    %4 = vector.load %arg4[%c0_4, %c0_5] : memref<1x32xf32, #tpu.memory_space<vmem>>, vector<1x32xf32>
    %5 = vector.shape_cast %4 : vector<1x32xf32> to vector<32xf32>
    %6 = vector.extract_strided_slice %1 {offsets = [0, 0], sizes = [4, 32], strides = [1, 1]} : vector<4x64xf32> to vector<4x32xf32>
    %cst = arith.constant dense<0.000000e+00> : vector<4xf32>
    %7 = vector.multi_reduction <add>, %6, %cst [1] : vector<4x32xf32> to vector<4xf32>
    %8 = vector.shape_cast %7 : vector<4xf32> to vector<4x1xf32>
    %cst_6 = arith.constant 3.200000e+01 : f32
    %9 = vector.broadcast %cst_6 : f32 to vector<4x1xf32>
    %10 = arith.divf %8, %9 : vector<4x1xf32>
    %11 = vector.broadcast %10 : vector<4x1xf32> to vector<4x32xf32>
    %12 = arith.subf %6, %11 : vector<4x32xf32>
    %13 = arith.mulf %12, %12 : vector<4x32xf32>
    %cst_7 = arith.constant dense<0.000000e+00> : vector<4xf32>
    %14 = vector.multi_reduction <add>, %13, %cst_7 [1] : vector<4x32xf32> to vector<4xf32>
    %15 = vector.shape_cast %14 : vector<4xf32> to vector<4x1xf32>
    %cst_8 = arith.constant 3.200000e+01 : f32
    %16 = vector.broadcast %cst_8 : f32 to vector<4x1xf32>
    %17 = arith.divf %15, %16 : vector<4x1xf32>
    %18 = vector.broadcast %10 : vector<4x1xf32> to vector<4x32xf32>
    %19 = arith.subf %6, %18 : vector<4x32xf32>
    %cst_9 = arith.constant 9.99999974E-6 : f32
    %20 = vector.broadcast %cst_9 : f32 to vector<4x1xf32>
    %21 = arith.addf %17, %20 : vector<4x1xf32>
    %22 = math.rsqrt %21 : vector<4x1xf32>
    %23 = vector.broadcast %22 : vector<4x1xf32> to vector<4x32xf32>
    %24 = arith.mulf %19, %23 : vector<4x32xf32>
    %25 = vector.shape_cast %3 : vector<32xf32> to vector<1x32xf32>
    %26 = vector.broadcast %25 : vector<1x32xf32> to vector<4x32xf32>
    %27 = arith.mulf %24, %26 : vector<4x32xf32>
    %28 = vector.shape_cast %5 : vector<32xf32> to vector<1x32xf32>
    %29 = vector.broadcast %28 : vector<1x32xf32> to vector<4x32xf32>
    %30 = arith.addf %27, %29 : vector<4x32xf32>
    %31 = vector.extract_strided_slice %1 {offsets = [0, 32], sizes = [4, 32], strides = [1, 1]} : vector<4x64xf32> to vector<4x32xf32>
    %cst_10 = arith.constant dense<0.000000e+00> : vector<4xf32>
    %32 = vector.multi_reduction <add>, %31, %cst_10 [1] : vector<4x32xf32> to vector<4xf32>
    %33 = vector.shape_cast %32 : vector<4xf32> to vector<4x1xf32>
    %cst_11 = arith.constant 3.200000e+01 : f32
    %34 = vector.broadcast %cst_11 : f32 to vector<4x1xf32>
    %35 = arith.divf %33, %34 : vector<4x1xf32>
    %36 = vector.broadcast %35 : vector<4x1xf32> to vector<4x32xf32>
    %37 = arith.subf %31, %36 : vector<4x32xf32>
    %38 = arith.mulf %37, %37 : vector<4x32xf32>
    %cst_12 = arith.constant dense<0.000000e+00> : vector<4xf32>
    %39 = vector.multi_reduction <add>, %38, %cst_12 [1] : vector<4x32xf32> to vector<4xf32>
    %40 = vector.shape_cast %39 : vector<4xf32> to vector<4x1xf32>
    %cst_13 = arith.constant 3.200000e+01 : f32
    %41 = vector.broadcast %cst_13 : f32 to vector<4x1xf32>
    %42 = arith.divf %40, %41 : vector<4x1xf32>
    %43 = vector.broadcast %35 : vector<4x1xf32> to vector<4x32xf32>
    %44 = arith.subf %31, %43 : vector<4x32xf32>
    %cst_14 = arith.constant 9.99999974E-6 : f32
    %45 = vector.broadcast %cst_14 : f32 to vector<4x1xf32>
    %46 = arith.addf %42, %45 : vector<4x1xf32>
    %47 = math.rsqrt %46 : vector<4x1xf32>
    %48 = vector.broadcast %47 : vector<4x1xf32> to vector<4x32xf32>
    %49 = arith.mulf %44, %48 : vector<4x32xf32>
    %50 = vector.shape_cast %3 : vector<32xf32> to vector<1x32xf32>
    %51 = vector.broadcast %50 : vector<1x32xf32> to vector<4x32xf32>
    %52 = arith.mulf %49, %51 : vector<4x32xf32>
    %53 = vector.shape_cast %5 : vector<32xf32> to vector<1x32xf32>
    %54 = vector.broadcast %53 : vector<1x32xf32> to vector<4x32xf32>
    %55 = arith.addf %52, %54 : vector<4x32xf32>
    %56 = tpu.concatenate %30, %55 in 1 : vector<4x32xf32>, vector<4x32xf32> -> vector<4x64xf32>
    %57 = arith.truncf %56 : vector<4x64xf32> to vector<4x64xbf16>
    %c0_15 = arith.constant 0 : index
    %c0_16 = arith.constant 0 : index
    %58 = vector.load %arg5[%c0_15, %c0_16] : memref<64x128xbf16, #tpu.memory_space<vmem>>, vector<64x128xbf16>
    %cst_17 = arith.constant dense<0.000000e+00> : vector<4x128xf32>
    %59 = tpu.matmul %57, %58, %cst_17 {dimension_numbers = #tpu.dot_dimension_numbers<[1], [0], [0], [1], [0, 0, 1, 1], [], []>} : vector<4x64xbf16>, vector<64x128xbf16>, vector<4x128xf32> -> vector<4x128xf32>
    %c0_18 = arith.constant 0 : index
    %c0_19 = arith.constant 0 : index
    %60 = vector.load %arg6[%c0_18, %c0_19] : memref<1x128xf32, #tpu.memory_space<vmem>>, vector<1x128xf32>
    %61 = vector.shape_cast %60 : vector<1x128xf32> to vector<128xf32>
    %62 = vector.shape_cast %61 : vector<128xf32> to vector<1x128xf32>
    %63 = vector.broadcast %62 : vector<1x128xf32> to vector<4x128xf32>
    %64 = arith.addf %59, %63 : vector<4x128xf32>
    %65 = vector.extract_strided_slice %64 {offsets = [0, 0], sizes = [4, 64], strides = [1, 1]} : vector<4x128xf32> to vector<4x64xf32>
    %66 = vector.extract_strided_slice %64 {offsets = [0, 64], sizes = [4, 64], strides = [1, 1]} : vector<4x128xf32> to vector<4x64xf32>
    %67 = arith.negf %66 : vector<4x64xf32>
    %68 = math.exp %67 : vector<4x64xf32>
    %cst_20 = arith.constant 1.000000e+00 : f32
    %69 = vector.broadcast %cst_20 : f32 to vector<4x64xf32>
    %70 = arith.addf %69, %68 : vector<4x64xf32>
    %71 = arith.divf %69, %70 : vector<4x64xf32>
    %72 = arith.mulf %66, %71 : vector<4x64xf32>
    %73 = arith.mulf %65, %72 : vector<4x64xf32>
    %74 = arith.truncf %73 : vector<4x64xf32> to vector<4x64xbf16>
    %c0_21 = arith.constant 0 : index
    %c0_22 = arith.constant 0 : index
    %75 = vector.load %arg7[%c0_21, %c0_22] : memref<64x32xbf16, #tpu.memory_space<vmem>>, vector<64x32xbf16>
    %cst_23 = arith.constant dense<0.000000e+00> : vector<4x32xf32>
    %76 = tpu.matmul %74, %75, %cst_23 {dimension_numbers = #tpu.dot_dimension_numbers<[1], [0], [0], [1], [0, 0, 1, 1], [], []>} : vector<4x64xbf16>, vector<64x32xbf16>, vector<4x32xf32> -> vector<4x32xf32>
    %c0_24 = arith.constant 0 : index
    %c0_25 = arith.constant 0 : index
    %77 = vector.load %arg8[%c0_24, %c0_25] : memref<1x32xf32, #tpu.memory_space<vmem>>, vector<1x32xf32>
    %78 = vector.shape_cast %77 : vector<1x32xf32> to vector<32xf32>
    %79 = vector.shape_cast %78 : vector<32xf32> to vector<1x32xf32>
    %80 = vector.broadcast %79 : vector<1x32xf32> to vector<4x32xf32>
    %81 = arith.addf %76, %80 : vector<4x32xf32>
    %c0_26 = arith.constant 0 : index
    %c0_27 = arith.constant 0 : index
    %c0_28 = arith.constant 0 : index
    %82 = vector.load %arg9[%c0_26, %c0_27, %c0_28] : memref<1x4x32xf32, #tpu.memory_space<vmem>>, vector<1x4x32xf32>
    %83 = vector.shape_cast %82 : vector<1x4x32xf32> to vector<4x32xf32>
    %84 = vector.shape_cast %81 : vector<4x32xf32> to vector<1x4x32xf32>
    tpu.vector_store %arg9[%c0_26, %c0_27, %c0_28], %84 {strides = array<i32>} : memref<1x4x32xf32, #tpu.memory_space<vmem>>, vector<1x4x32xf32>,
    return
  }
  func.func @transform_0(%arg0: i32, %arg1: i32) -> (i32, i32, i32) {
    %c0_i32 = arith.constant 0 : i32
    %c0_i32_0 = arith.constant 0 : i32
    return %arg0, %arg1, %c0_i32 : i32, i32, i32
  }
  func.func @transform_1(%arg0: i32, %arg1: i32) -> (i32, i32) {
    %c0_i32 = arith.constant 0 : i32
    %c0_i32_0 = arith.constant 0 : i32
    %c0_i32_1 = arith.constant 0 : i32
    return %c0_i32, %c0_i32_0 : i32, i32
  }
  func.func @transform_2(%arg0: i32, %arg1: i32) -> (i32, i32) {
    %c0_i32 = arith.constant 0 : i32
    %c0_i32_0 = arith.constant 0 : i32
    %c0_i32_1 = arith.constant 0 : i32
    return %c0_i32, %c0_i32_0 : i32, i32
  }
  func.func @transform_3(%arg0: i32, %arg1: i32) -> (i32, i32) {
    %c0_i32 = arith.constant 0 : i32
    %c0_i32_0 = arith.constant 0 : i32
    %c0_i32_1 = arith.constant 0 : i32
    return %c0_i32, %c0_i32_0 : i32, i32
  }
  func.func @transform_4(%arg0: i32, %arg1: i32) -> (i32, i32) {
    %c0_i32 = arith.constant 0 : i32
    %c0_i32_0 = arith.constant 0 : i32
    %c0_i32_1 = arith.constant 0 : i32
    return %c0_i32, %c0_i32_0 : i32, i32
  }
  func.func @transform_5(%arg0: i32, %arg1: i32) -> (i32, i32) {
    %c0_i32 = arith.constant 0 : i32
    %c0_i32_0 = arith.constant 0 : i32
    %c0_i32_1 = arith.constant 0 : i32
    return %c0_i32, %c0_i32_0 : i32, i32
  }
  func.func @transform_6(%arg0: i32, %arg1: i32) -> (i32, i32) {
    %c0_i32 = arith.constant 0 : i32
    %c0_i32_0 = arith.constant 0 : i32
    %c0_i32_1 = arith.constant 0 : i32
    return %c0_i32, %c0_i32_0 : i32, i32
  }
  func.func @transform_7(%arg0: i32, %arg1: i32) -> (i32, i32, i32) {
    %c0_i32 = arith.constant 0 : i32
    %c0_i32_0 = arith.constant 0 : i32
    return %arg0, %arg1, %c0_i32 : i32, i32, i32
  }
}

</mosaic_0001>

<bundles_post_ra>
// kernel: tpu_custom_call.1
= control target key start
LH: loop header
LB: loop body
LE: loop exit
PB: predicated region body
PF: predicated region fallthrough
CT: control target
= control target key end

     0   :  { %12 = vsyncpa [#allocation3], 0  ;;  %s993_s0 = inlined_call_operand.vmem [shape: f32[2,4,64], index: 0, kind: input, shape index: {}]   ;;  %s994_s1 = inlined_call_operand.vmem [shape: f32[1,32], index: 1, kind: input, shape index: {}]   ;;  %s995_s2 = inlined_call_operand.vmem [shape: f32[1,32], index: 2, kind: input, shape index: {}]   ;;  %s996_s3 = inlined_call_operand.vmem [shape: bf16[64,128], index: 3, kind: input, shape index: {}]   ;;  %s997_s4 = inlined_call_operand.vmem [shape: f32[1,128], index: 4, kind: input, shape index: {}]   ;;  %s998_s5 = inlined_call_operand.vmem [shape: bf16[64,32], index: 5, kind: input, shape index: {}]   ;;  %s999_s6 = inlined_call_operand.vmem [shape: f32[1,32], index: 6, kind: input, shape index: {}]   ;;  %s1000_s7 = inlined_call_operand.hbm [shape: f32[2,4,32], index: 7, kind: output, shape index: {}]  }
   0x1   :  { %14 = vsyncpa [#allocation3 + $0x1], 0  ;;  %s853_s24 = smov 0   ;;  %s855_s25 = smov 0  }
   0x2   :  { %s857_s26 = smov 0   ;;  %s859_s27 = smov 0  }
   0x3   :  { %s861_s28 = smov 0   ;;  %s863_s29 = smov 0  }
   0x4 LB: > { %s602_s30 = sadd.s32 4294967295, %s807_s29   ;;  %s603_s8 = sadd.s32 4294967294, %s807_s29   ;;  %s807_s29 = sphi %s863_s29, %s20_s29   ;;  %s803_s28 = sphi %s861_s28, %s1007_s28   ;;  %s799_s27 = sphi %s859_s27, %s1006_s27   ;;  %s795_s26 = sphi %s857_s26, %s1005_s26   ;;  %s791_s25 = sphi %s855_s25, %s1004_s25   ;;  %s787_s24 = sphi %s853_s24, %s1003_s24  }
   0x5   : > { %s32_s9 = sadd.s32 1, %s803_s28  ;;  %s195_s10 = sadd.s32 1, %s795_s26 }
   0x6   : > { %p34_p0 = scmp.ge.s32.totalorder %s32_s9, 2  ;;  %p205_p1 = scmp.ne.s32.totalorder %s795_s26, %s791_s25 }
   0x7   : > { %p206_p2 = scmp.eq.s32.totalorder %s602_s30, 1  ;;  %p211_p3 = scmp.ne.s32.totalorder %s791_s25, %s787_s24 }
   0x8   : > { %s1009_s9 = smov (%p34_p0, %s32_s9), 0  ;;  %p212_p5 = scmp.eq.s32.totalorder %s603_s8, 1 }
   0x9   : > { %p893_p4 = por %p206_p2, %p205_p1  ;;  %s190_s12 = ssub.s32 %s803_s28, %s1009_s9 }
   0xa   : > { %p606_p6 = scmp.ge.s32.totalorder %s807_s29, 1  ;;  %p193_p7 = scmp.eq.s32.totalorder %s190_s12, 0 }
   0xb   : > { %p900_p8 = por %p212_p5, %p211_p3  ;;  %p258_p9 = scmp.lt.s32.totalorder %s807_s29, 3 }
   0xc   : > { %s906_s14 = scalar_select %p193_p7, %s795_s26, %s195_s10  }
   0xd   : > { %p259_p10 = pnand %p606_p6, %p258_p9 }
   0xe   : > { %p292_p11 = scmp.lt.s32.totalorder (!%p259_p10), %s799_s27, 1  ;;  %s809_s20 = smov (!%p259_p10), 96  }
   0xf   : > { %262 = sbr.rel (%p259_p10) target bundleno = 913 (0x391), region = 48  ;;  %s811_s23 = smov (!%p259_p10), 32  }
  0x14   : > { %s293_s15 = scalar_select %p292_p11, %s799_s27, 1  ;;  %vm303_vm0 = vcmask 257024   ;;  %v810_v2 = vmov 32.0   ;;  %v715_v20 = vld [vmem:[%s995_s2] ss:$0 sm:$0xff]  ;;  %v651_v27 = vld [vmem:[%s996_s3 + $0x18] sm:$0xff] }
  0x15   : > { %719 = vrcp.f32 %v810_v2  ;;  %v716_v23 = vld [vmem:[%s994_s1] ss:$0 sm:$0xff]  ;;  %426 = vmatpush.bf16.msra.mxu0 %v651_v27  ;;  %v650_v28 = vld [vmem:[%s996_s3 + $0x10] sm:$0xff]  ;;  %v649_v29 = vld [vmem:[%s996_s3 + $0x8] sm:$0xff]  ;;  %vm379_vm8 = vcmask 261120   ;;  %vm418_vm9 = vcmask 523264  }
  0x16   : > { %s608_s16 = sshll.u32 %s293_s15, 2  ;;  %v648_v31 = vld [vmem:[%s996_s3] sm:$0xff]  ;;  %v655_v61 = vld [vmem:[%s998_s5 + $0x18] sm:$0xff]  ;;  %v654_v63 = vld [vmem:[%s998_s5 + $0x10] sm:$0xff] }
  0x17   : > { %s298_s19 = scalar_lea.vmem %s993_s0, %s608_s16  ;;  %v717_v58 = vld [vmem:[%s997_s4] ss:$0 sm:$0xff]  ;;  %504 = vmatpush.bf16.msra.mxu1 %v655_v61  ;;  %s812_s16 = smov 64  }
  0x18   : > { %v300_v0 = vld [vmem:[%s298_s19] sm:$0xf]  ;;  %s289_s19 = sand.u32 1, %s791_s25  }
  0x19   : > { %342 = vrot.lane.b32.xlu0 %v300_v0, %s809_s20  ;;  %v304_v1 = vsel %vm303_vm0, %v300_v0, 0.0  ;;  %427 = vmatpush.bf16.msra.mxu0 %v650_v28  ;;  %s607_s21 = sshll.u32 %s289_s19, 2 }
  0x1a   : > { %305 = vadd.xlane.f32.xlu1 %v304_v1  ;;  %s291_s12 = scalar_lea.vmem [#allocation2], %s607_s21  ;;  %s749_s21 = scalar_lea.hbm %s1000_s7, 8 }
  0x1b   : > { %v720_v3 = vpop.eup %719  ;;  %505 = vmatpush.bf16.msra.mxu1 %v654_v63  ;;  %s528_s15 = sshll.u32 %s291_s12, 4  ;;  %s529_s15 = int_to_ptr.vmem [resolvable:$true] %s528_s15 }
  0x1c   : > { %v308_v4 = vmul.f32 32.0, %v720_v3  ;;  %vm312_vm1 = vweird.f32 %v720_v3 }
  0x1d   : > { %428 = vmatpush.bf16.msra.mxu0 %v649_v29 }
  0x1e   : > { %v309_v5 = vsub.f32 1.0, %v308_v4 }
  0x20   : > { %v310_v6 = vmul.f32 %v720_v3, %v309_v5 }
  0x21   : > { %429 = vmatpush.bf16.msra.mxu0 %v648_v31 }
  0x22   : > { %v311_v7 = vadd.f32 %v720_v3, %v310_v6 }
  0x24   : > { %v313_v9 = vsel %vm312_vm1, %v720_v3, %v311_v7 }
  0x8b   : > { %v343_v8 = vpop.permute.xlu0 %342 }
  0x8c   : > { %v345_v10 = vsel %vm303_vm0, %v343_v8, 0.0 }
  0x8d   : > { %346 = vadd.xlane.f32.xlu0 %v345_v10  ;;  %v306_v11 = vpop.xlane.xlu1 %305 }
  0x8e   : > { %v314_v12 = vmul.f32 %v313_v9, %v306_v11 }
  0x90   : > { %v315_v13 = vsub.f32 %v300_v0, %v314_v12 }
  0x92   : > { %v316_v14 = vmul.f32 %v315_v13, %v315_v13 }
  0x94   : > { %v317_v15 = vsel %vm303_vm0, %v316_v14, 0.0 }
  0x95   : > { %318 = vadd.xlane.f32.xlu2 %v317_v15  ;;  %v652_v15 = vld [vmem:[%s998_s5] sm:$0xff] }
 0x100   : > { %v347_v16 = vpop.xlane.xlu0 %346 }
 0x101   : > { %v348_v17 = vmul.f32 %v347_v16, %v313_v9 }
 0x103   : > { %v349_v18 = vsub.f32 %v300_v0, %v348_v17  ;;  %v653_v0 = vld [vmem:[%s998_s5 + $0x8] sm:$0xff] }
 0x104   : > { %506 = vmatpush.bf16.msra.mxu1 %v653_v0 }
 0x105   : > { %v350_v19 = vmul.f32 %v349_v18, %v349_v18 }
 0x107   : > { %352 = vrot.lane.b32.xlu1 %v350_v19, %s809_s20  ;;  %s645_s20 = sshll.u32 %s799_s27, 2  ;;  %v718_v19 = vld [vmem:[%s999_s6] ss:$0 sm:$0xff]  ;;  %s515_s27 = scalar_lea.sflag [#allocation3], %s289_s19 }
 0x108   : > { %v319_v24 = vpop.xlane.xlu2 %318  ;;  %507 = vmatpush.bf16.msra.mxu1 %v652_v15  ;;  %s526_s30 = scalar_lea.hbm %s1000_s7, %s645_s20 }
 0x109   : > { %v320_v25 = vmul.f32 %v319_v24, %v313_v9 }
 0x10b   : > { %v321_v26 = vadd.f32 1e-05, %v320_v25 }
 0x10d   : > { %721 = vrsqrt.f32 %v321_v26  ;;  %vm328_vm2 = vweird.f32 %v321_v26 }
 0x10f   : > { %375 = vrot.lane.b32.xlu1 %v715_v20, %s811_s23 }
 0x113   : > { %v722_v30 = vpop.eup %721 }
 0x114   : > { %v323_v32 = vmul.f32 %v722_v30, %v321_v26  ;;  %vm329_vm3 = vweird.f32 %v722_v30 }
 0x115   : > { %vm330_vm4 = vmor %vm328_vm2, %vm329_vm3 }
 0x116   : > { %v324_v33 = vmul.f32 %v722_v30, %v323_v32 }
 0x118   : > { %v325_v37 = vmul.f32 0.5, %v324_v33 }
 0x11a   : > { %v326_v38 = vsub.f32 1.5, %v325_v37 }
 0x11c   : > { %v327_v40 = vmul.f32 %v722_v30, %v326_v38 }
 0x11e   : > { %v331_v43 = vsel %vm330_vm4, %v722_v30, %v327_v40 }
 0x11f   : > { %v332_v46 = vmul.f32 %v331_v43, %v315_v13 }
 0x121   : > { %v336_v50 = vmul.f32 %v716_v23, %v332_v46 }
 0x123   : > { %v340_v54 = vadd.f32 %v715_v20, %v336_v50 }
 0x179   : > { %v353_v21 = vpop.permute.xlu1 %352 }
 0x17a   : > { %v355_v22 = vsel %vm303_vm0, %v353_v21, 0.0 }
 0x17b   : > { %356 = vadd.xlane.f32.xlu2 %v355_v22 }
 0x181   : > { %v376_v52 = vpop.permute.xlu1 %375 }
 0x193   : > { %371 = vrot.lane.b32.xlu2 %v716_v23, %s811_s23 }
 0x1ee   : > { %v357_v34 = vpop.xlane.xlu2 %356 }
 0x1ef   : > { %v358_v35 = vmul.f32 %v357_v34, %v313_v9 }
 0x1f1   : > { %v359_v36 = vadd.f32 1e-05, %v358_v35 }
 0x1f3   : > { %723 = vrsqrt.f32 %v359_v36  ;;  %vm366_vm6 = vweird.f32 %v359_v36 }
 0x1f6   : > { %v372_v49 = vpop.permute.xlu2 %371 }
 0x1f9   : > { %v724_v39 = vpop.eup %723 }
 0x1fa   : > { %v361_v41 = vmul.f32 %v724_v39, %v359_v36  ;;  %vm367_vm5 = vweird.f32 %v724_v39 }
 0x1fb   : > { %vm368_vm7 = vmor %vm366_vm6, %vm367_vm5 }
 0x1fc   : > { %v362_v42 = vmul.f32 %v724_v39, %v361_v41 }
 0x1fe   : > { %v363_v44 = vmul.f32 0.5, %v362_v42 }
 0x200   : > { %v364_v45 = vsub.f32 1.5, %v363_v44 }
 0x202   : > { %v365_v47 = vmul.f32 %v724_v39, %v364_v45 }
 0x204   : > { %v369_v48 = vsel %vm368_vm7, %v724_v39, %v365_v47 }
 0x205   : > { %v370_v51 = vmul.f32 %v369_v48, %v349_v18 }
 0x207   : > { %v374_v53 = vmul.f32 %v372_v49, %v370_v51 }
 0x209   : > { %v378_v55 = vadd.f32 %v376_v52, %v374_v53 }
 0x20b   : > { %v380_v56 = vsel %vm379_vm8, %v340_v54, %v378_v55 }
 0x20c   : > { %v381_v57 = vpack.c.bf16 %v380_v56, %v380_v56 }
 0x20e   : > { %625 = vmatmul.msk.bf16.vlgmr.msra.gmra.mxu0 %vm418_vm9, %v381_v57 }
 0x28b   : > { %v431_v59 = vpop.f32.mrf.mxu0 }
 0x28c   : > { %v432_v60 = vadd.f32 %v717_v58, %v431_v59 }
 0x28e   : > { %v626_v62 = vmul.f32 -1.442695, %v432_v60 }
 0x290   : > { %725 = vpow2.f32 %v626_v62 }
 0x293   : > { %v433_v1 = vpop.f32.mrf.mxu0 }
 0x296   : > { %v726_v2 = vpop.eup %725 }
 0x297   : > { %v438_v3 = vadd.f32 1.0, %v726_v2 }
 0x299   : > { %727 = vrcp.f32 %v438_v3  ;;  %v450_v7 = vand.u32 2147483648, %v438_v3  ;;  %v448_v9 = vand.u32 2147483647, %v438_v3  ;;  %vm444_vm11 = vweird.f32 %v438_v3 }
 0x29b   : > { %v451_v11 = vor.u32 1.1754944e-38, %v450_v7  ;;  %vm449_vm13 = vcmp.eq.f32.partialorder %v448_v9, 8.507059e+37 }
 0x29f   : > { %v728_v4 = vpop.eup %727 }
 0x2a0   : > { %v440_v5 = vmul.f32 %v728_v4, %v438_v3  ;;  %vm445_vm10 = vweird.f32 %v728_v4 }
 0x2a1   : > { %vm446_vm12 = vmor %vm444_vm11, %vm445_vm10 }
 0x2a2   : > { %v441_v6 = vsub.f32 1.0, %v440_v5 }
 0x2a4   : > { %v442_v8 = vmul.f32 %v728_v4, %v441_v6 }
 0x2a6   : > { %v443_v10 = vadd.f32 %v728_v4, %v442_v8 }
 0x2a8   : > { %v447_v12 = vsel %vm446_vm12, %v728_v4, %v443_v10 }
 0x2a9   : > { %v452_v13 = vsel %vm449_vm13, %v451_v11, %v447_v12 }
 0x2aa   : > { %v454_v14 = vmul.f32 %v452_v13, %v432_v60 }
 0x2ac   : > { %456 = vrot.lane.b32.xlu2 %v454_v14, %s812_s16  ;;  %s530_s16 = sshll.u32 %s526_s30, 4  ;;  %s531_s16 = int_to_ptr.hbm [resolvable:$true] %s530_s16 }
 0x2ad   : > { %s743_s17 = sshra.s32 %s531_s16, 4  ;;  %s744_s17 = int_to_ptr.hbm [resolvable:$true] %s743_s17 }
 0x2ae   : > { %s745_s18 = scalar_lea.hbm %s744_s17, 4  ;;  %p750_p1 = scmp.lt.s32.totalorder %s744_s17, %s1000_s7 }
 0x2af   : > { %p746_p12 = scmp.ne.s32.totalorder %s744_s17, %s745_s18  ;;  %p751_p2 = scmp.lt.s32.totalorder %s749_s21, %s745_s18 }
 0x2b1   : > { %p747_p13 = pnand %p746_p12, %p893_p4  ;;  %p752_p3 = por %p751_p2, %p750_p1 }
 0x2b3   : > { %p748_p0 = pneg %p747_p13 }
 0x2b5   : > { %p753_p5 = pnand %p752_p3, %p748_p0 }
 0x306   : > { %v457_v16 = vpop.permute.xlu2 %456 }
 0x307   : > { %v459_v17 = vmul.f32 %v457_v16, %v432_v60 }
 0x309   : > { %v460_v18 = vpack.c.bf16 %v459_v17, %v459_v17 }
 0x30b   : > { %643 = vmatmul.msk.bf16.vlgmr.msra.gmra.mxu1 %vm418_vm9, %v460_v18 }
 0x388   : > { %v509_v20 = vpop.f32.mrf.mxu1 }
 0x389   : > { %v510_v21 = vadd.f32 %v718_v19, %v509_v20 }
 0x38b   : > { %513 = vst.msk [vmem:[%s291_s12] sm:$0xf] %vm303_vm0, %v510_v21 }
 0x38c   : > { %756 = shalt.err (!%p753_p5)
}
 0x38d   : > { %656 = dma.vmem_to_hbm [thread:$0]  (%p893_p4), %s529_s15, 64, %s531_s16, %s515_s27  }
 0x390   : > { %v511_v22 = vpop.f32.mrf.mxu1 }
 0x391 PF: > { %p662_p6 = scmp.ge.s32.totalorder %s807_s29, 2  ;;  %s542_s19 = sand.u32 1, %s787_s24  }
 0x392   : > { %s543_s8 = scalar_lea.sflag [#allocation3], %s542_s19 }
 0x393   : > { %p659_p7 = pnand %p662_p6, %p900_p8 }
 0x395   : > { %p660_p9 = pneg %p659_p7 }
 0x397   : > { %782 = dma.done.wait (%p660_p9), %s543_s8, 64  }
 0x398   : > { %784 = vsyncadd (%p660_p9), %s543_s8, 4294967232  ;;  %s20_s29 = sadd.s32 1, %s807_s29   ;;  %s1003_s24 = smov %s791_s25 }
 0x399   : > { %p17_p10 = scmp.ge.s32.totalorder %s20_s29, 4   ;;  %s1004_s25 = smov %s795_s26 }
 0x39a   : > { %s1005_s26 = smov %s906_s14  ;;  %s1006_s27 = smov %s803_s28 }
 0x39b   : > { %s1007_s28 = smov %s1009_s9  ;;  %19 = sbr.rel (!%p17_p10) target bundleno = 4 (0x4), region = 83 }
 0x3a0   :  { %549 = vsyncpa [#allocation3], 1 }
 0x3a1   :  { %551 = vsyncpa [#allocation3 + $0x1], 1 }

</bundles_post_ra>
